<compile_context>
chip_gen: v7x
topology: tpu7x:2x2x1
jax: 0.10.0
libtpu: 0.0.40
codegen_flags: <defaults>
</compile_context>

<pallas_src>
import jax
import jax.numpy as jnp
from jax.experimental import pallas as pl
from jax.experimental.pallas import tpu as pltpu

NEG_SLOPE = 0.01   # PyTorch nn.LeakyReLU default
LANES = 128


def mlp_kernel(w1_ref, b1_ref, w2_ref, b2_ref, x_ref, o_ref):
    # x_ref: (2, R, 128) VMEM block (feature, batch-rows, batch-lanes).
    # o_ref: (4, R, 128) VMEM block.
    # w1_ref: (4, 2) SMEM, b1_ref: (4,) SMEM, w2_ref: (4, 4) SMEM, b2_ref: (4,) SMEM.
    x0 = x_ref[0]            # (R, 128) — full-vreg occupancy
    x1 = x_ref[1]            # (R, 128)

    # Layer 1: h_j = w1[j,0]*x0 + w1[j,1]*x1 + b1[j], then LeakyReLU (pure VPU).
    h = []
    for j in range(4):
        hj = w1_ref[j, 0] * x0 + w1_ref[j, 1] * x1 + b1_ref[j]
        h.append(jnp.where(hj >= 0, hj, NEG_SLOPE * hj))

    # Layer 2: out_j = sum_i w2[j,i]*h_i + b2[j]; direct dense store per row.
    for j in range(4):
        oj = (w2_ref[j, 0] * h[0] + w2_ref[j, 1] * h[1]
              + w2_ref[j, 2] * h[2] + w2_ref[j, 3] * h[3] + b2_ref[j])
        o_ref[j] = oj.astype(o_ref.dtype)


def mlp_forward_feature_major(x_fm, w1, b1, w2, b2, *, rows_per_tile=512):
    """Core entry point (zero wrapper data movement for aligned B).

    x_fm: (2, B) f32 feature-major activations.  Returns (4, B) f32.
    w1: (4, 2); b1: (4,); w2: (4, 4); b2: (4,)  (PyTorch Linear layout).
    """
    assert x_fm.shape[0] == 2
    B = x_fm.shape[1]

    cols = -(-B // LANES)                              # ceil(B / 128)
    R = max(8, min(int(rows_per_tile), ((cols + 7) // 8) * 8))   # multiple of 8
    n_tiles = -(-cols // R)
    cols_pad = n_tiles * R
    B_pad = cols_pad * LANES

    x_fm = x_fm.astype(jnp.float32)
    if B_pad != B:                                     # ragged tail only
        x_fm = jnp.pad(x_fm, ((0, 0), (0, B_pad - B)))
    x3 = x_fm.reshape(2, cols_pad, LANES)              # free row-major view

    out3 = pl.pallas_call(
        mlp_kernel,
        out_shape=jax.ShapeDtypeStruct((4, cols_pad, LANES), jnp.float32),
        grid=(n_tiles,),
        in_specs=[
            pl.BlockSpec(memory_space=pltpu.MemorySpace.SMEM),   # w1 (4, 2), resident
            pl.BlockSpec(memory_space=pltpu.MemorySpace.SMEM),   # b1 (4,)
            pl.BlockSpec(memory_space=pltpu.MemorySpace.SMEM),   # w2 (4, 4)
            pl.BlockSpec(memory_space=pltpu.MemorySpace.SMEM),   # b2 (4,)
            pl.BlockSpec((2, R, LANES), lambda i: (0, i, 0)),    # x block
        ],
        out_specs=pl.BlockSpec((4, R, LANES), lambda i: (0, i, 0)),
        compiler_params=pltpu.CompilerParams(
            # Batch axis is embarrassingly parallel -> megacore sharding on v7x.
            dimension_semantics=("parallel",),
        ),
        # NOTE: ~3 MiB double-buffered VMEM at R=512; no vmem_limit_bytes or
        # pl.Buffered(3) needed unless a profile shows exposed DMA.
    )(w1.astype(jnp.float32), b1.astype(jnp.float32),
      w2.astype(jnp.float32), b2.astype(jnp.float32), x3)

    out_fm = out3.reshape(4, B_pad)                    # free row-major view
    if B_pad != B:
        out_fm = out_fm[:, :B]
    return out_fm


def mlp_forward(x, w1, b1, w2, b2, *, rows_per_tile=512):
    """PyTorch-layout wrapper: x (B, 2) -> (B, 4).

    Transposes once at the boundary; callers that can supply feature-major
    activations should use mlp_forward_feature_major directly (no extra HBM
    passes).
    """
    out_fm = mlp_forward_feature_major(
        jnp.transpose(x), w1, b1, w2, b2, rows_per_tile=rows_per_tile)
    return jnp.transpose(out_fm)


def init_params(key, gain=0.02):
    """Matches MLP.init_weights('normal', gain=0.02): W ~ N(0, gain), b = 0."""
    k1, k2 = jax.random.split(key)
    w1 = gain * jax.random.normal(k1, (4, 2), dtype=jnp.float32)   # Linear(2, 4).weight
    b1 = jnp.zeros((4,), dtype=jnp.float32)
    w2 = gain * jax.random.normal(k2, (4, 4), dtype=jnp.float32)   # Linear(4, 4).weight
    b2 = jnp.zeros((4,), dtype=jnp.float32)
    return w1, b1, w2, b2


def _ref_forward(x, w1, b1, w2, b2):
    h = x @ w1.T + b1
    h = jnp.where(h >= 0, h, NEG_SLOPE * h)
    return h @ w2.T + b2


if __name__ == "__main__":
    key = jax.random.PRNGKey(0)
    k_x, k_p = jax.random.split(key)
    w1, b1, w2, b2 = init_params(k_p)

    # Small demo batch, PyTorch layout (B, 2).
    batch = 8
    x = jax.random.normal(k_x, (batch, 2), dtype=jnp.float32)
    out = jax.block_until_ready(mlp_forward(x, w1, b1, w2, b2))
    assert out.shape == (batch, 4)
    assert jnp.allclose(out, _ref_forward(x, w1, b1, w2, b2), atol=1e-5, rtol=1e-5)

    # Exercise the ragged-tail / multi-sublane path (B not a multiple of 128).
    batch2 = 1000
    x2 = jax.random.normal(jax.random.PRNGKey(2), (batch2, 2), dtype=jnp.float32)
    out2 = jax.block_until_ready(mlp_forward(x2, w1, b1, w2, b2))
    assert out2.shape == (batch2, 4)
    assert jnp.allclose(out2, _ref_forward(x2, w1, b1, w2, b2), atol=1e-5, rtol=1e-5)

    # TODO(synk): mutation_operator (Normal(0,1) weight perturbation) is not part
    # of forward(); not implemented in the kernel.
    print("KERNEL_OK")
</pallas_src>

<mosaic_0001>
module attributes {stable_mosaic.version = 11 : i64} {
  func.func @mlp_kernel(%arg0: i32, %arg1: memref<4x2xf32, #tpu.memory_space<smem>>, %arg2: memref<4xf32, #tpu.memory_space<smem>>, %arg3: memref<4x4xf32, #tpu.memory_space<smem>>, %arg4: memref<4xf32, #tpu.memory_space<smem>>, %arg5: memref<2x8x128xf32, #tpu.memory_space<vmem>>, %arg6: memref<4x8x128xf32, #tpu.memory_space<vmem>>) attributes {dimension_semantics = [#tpu.dimension_semantics<parallel>], iteration_bounds = array<i64: 1>, scalar_prefetch = 0 : i64, scratch_operands = 0 : i64, tpu.core_type = #tpu.core_type<tc>, window_params = [{transform_indices = @transform_0, window_bounds = array<i64: 4, 2>}, {transform_indices = @transform_1, window_bounds = array<i64: 4>}, {transform_indices = @transform_2, window_bounds = array<i64: 4, 4>}, {transform_indices = @transform_3, window_bounds = array<i64: 4>}, {transform_indices = @transform_4, window_bounds = array<i64: 2, 8, 128>}, {transform_indices = @transform_5, window_bounds = array<i64: 4, 8, 128>}]} {
    %c0 = arith.constant 0 : index
    %c0_0 = arith.constant 0 : index
    %c0_1 = arith.constant 0 : index
    %0 = vector.load %arg5[%c0, %c0_0, %c0_1] : memref<2x8x128xf32, #tpu.memory_space<vmem>>, vector<1x8x128xf32>
    %1 = vector.shape_cast %0 : vector<1x8x128xf32> to vector<8x128xf32>
    %c1 = arith.constant 1 : index
    %c0_2 = arith.constant 0 : index
    %c0_3 = arith.constant 0 : index
    %2 = vector.load %arg5[%c1, %c0_2, %c0_3] : memref<2x8x128xf32, #tpu.memory_space<vmem>>, vector<1x8x128xf32>
    %3 = vector.shape_cast %2 : vector<1x8x128xf32> to vector<8x128xf32>
    %c0_4 = arith.constant 0 : index
    %c0_5 = arith.constant 0 : index
    %4 = memref.load %arg1[%c0_4, %c0_5] : memref<4x2xf32, #tpu.memory_space<smem>>
    %5 = vector.broadcast %4 : f32 to vector<8x128xf32>
    %6 = arith.mulf %5, %1 : vector<8x128xf32>
    %c0_6 = arith.constant 0 : index
    %c1_7 = arith.constant 1 : index
    %7 = memref.load %arg1[%c0_6, %c1_7] : memref<4x2xf32, #tpu.memory_space<smem>>
    %8 = vector.broadcast %7 : f32 to vector<8x128xf32>
    %9 = arith.mulf %8, %3 : vector<8x128xf32>
    %10 = arith.addf %6, %9 : vector<8x128xf32>
    %c0_8 = arith.constant 0 : index
    %11 = memref.load %arg2[%c0_8] : memref<4xf32, #tpu.memory_space<smem>>
    %12 = vector.broadcast %11 : f32 to vector<8x128xf32>
    %13 = arith.addf %10, %12 : vector<8x128xf32>
    %cst = arith.constant 0.000000e+00 : f32
    %14 = vector.broadcast %cst : f32 to vector<8x128xf32>
    %15 = arith.cmpf oge, %13, %14 : vector<8x128xf32>
    %cst_9 = arith.constant 0.00999999977 : f32
    %16 = vector.broadcast %cst_9 : f32 to vector<8x128xf32>
    %17 = arith.mulf %16, %13 : vector<8x128xf32>
    %18 = arith.select %15, %13, %17 : vector<8x128xi1>, vector<8x128xf32>
    %c1_10 = arith.constant 1 : index
    %c0_11 = arith.constant 0 : index
    %19 = memref.load %arg1[%c1_10, %c0_11] : memref<4x2xf32, #tpu.memory_space<smem>>
    %20 = vector.broadcast %19 : f32 to vector<8x128xf32>
    %21 = arith.mulf %20, %1 : vector<8x128xf32>
    %c1_12 = arith.constant 1 : index
    %c1_13 = arith.constant 1 : index
    %22 = memref.load %arg1[%c1_12, %c1_13] : memref<4x2xf32, #tpu.memory_space<smem>>
    %23 = vector.broadcast %22 : f32 to vector<8x128xf32>
    %24 = arith.mulf %23, %3 : vector<8x128xf32>
    %25 = arith.addf %21, %24 : vector<8x128xf32>
    %c1_14 = arith.constant 1 : index
    %26 = memref.load %arg2[%c1_14] : memref<4xf32, #tpu.memory_space<smem>>
    %27 = vector.broadcast %26 : f32 to vector<8x128xf32>
    %28 = arith.addf %25, %27 : vector<8x128xf32>
    %cst_15 = arith.constant 0.000000e+00 : f32
    %29 = vector.broadcast %cst_15 : f32 to vector<8x128xf32>
    %30 = arith.cmpf oge, %28, %29 : vector<8x128xf32>
    %cst_16 = arith.constant 0.00999999977 : f32
    %31 = vector.broadcast %cst_16 : f32 to vector<8x128xf32>
    %32 = arith.mulf %31, %28 : vector<8x128xf32>
    %33 = arith.select %30, %28, %32 : vector<8x128xi1>, vector<8x128xf32>
    %c2 = arith.constant 2 : index
    %c0_17 = arith.constant 0 : index
    %34 = memref.load %arg1[%c2, %c0_17] : memref<4x2xf32, #tpu.memory_space<smem>>
    %35 = vector.broadcast %34 : f32 to vector<8x128xf32>
    %36 = arith.mulf %35, %1 : vector<8x128xf32>
    %c2_18 = arith.constant 2 : index
    %c1_19 = arith.constant 1 : index
    %37 = memref.load %arg1[%c2_18, %c1_19] : memref<4x2xf32, #tpu.memory_space<smem>>
    %38 = vector.broadcast %37 : f32 to vector<8x128xf32>
    %39 = arith.mulf %38, %3 : vector<8x128xf32>
    %40 = arith.addf %36, %39 : vector<8x128xf32>
    %c2_20 = arith.constant 2 : index
    %41 = memref.load %arg2[%c2_20] : memref<4xf32, #tpu.memory_space<smem>>
    %42 = vector.broadcast %41 : f32 to vector<8x128xf32>
    %43 = arith.addf %40, %42 : vector<8x128xf32>
    %cst_21 = arith.constant 0.000000e+00 : f32
    %44 = vector.broadcast %cst_21 : f32 to vector<8x128xf32>
    %45 = arith.cmpf oge, %43, %44 : vector<8x128xf32>
    %cst_22 = arith.constant 0.00999999977 : f32
    %46 = vector.broadcast %cst_22 : f32 to vector<8x128xf32>
    %47 = arith.mulf %46, %43 : vector<8x128xf32>
    %48 = arith.select %45, %43, %47 : vector<8x128xi1>, vector<8x128xf32>
    %c3 = arith.constant 3 : index
    %c0_23 = arith.constant 0 : index
    %49 = memref.load %arg1[%c3, %c0_23] : memref<4x2xf32, #tpu.memory_space<smem>>
    %50 = vector.broadcast %49 : f32 to vector<8x128xf32>
    %51 = arith.mulf %50, %1 : vector<8x128xf32>
    %c3_24 = arith.constant 3 : index
    %c1_25 = arith.constant 1 : index
    %52 = memref.load %arg1[%c3_24, %c1_25] : memref<4x2xf32, #tpu.memory_space<smem>>
    %53 = vector.broadcast %52 : f32 to vector<8x128xf32>
    %54 = arith.mulf %53, %3 : vector<8x128xf32>
    %55 = arith.addf %51, %54 : vector<8x128xf32>
    %c3_26 = arith.constant 3 : index
    %56 = memref.load %arg2[%c3_26] : memref<4xf32, #tpu.memory_space<smem>>
    %57 = vector.broadcast %56 : f32 to vector<8x128xf32>
    %58 = arith.addf %55, %57 : vector<8x128xf32>
    %cst_27 = arith.constant 0.000000e+00 : f32
    %59 = vector.broadcast %cst_27 : f32 to vector<8x128xf32>
    %60 = arith.cmpf oge, %58, %59 : vector<8x128xf32>
    %cst_28 = arith.constant 0.00999999977 : f32
    %61 = vector.broadcast %cst_28 : f32 to vector<8x128xf32>
    %62 = arith.mulf %61, %58 : vector<8x128xf32>
    %63 = arith.select %60, %58, %62 : vector<8x128xi1>, vector<8x128xf32>
    %c0_29 = arith.constant 0 : index
    %c0_30 = arith.constant 0 : index
    %64 = memref.load %arg3[%c0_29, %c0_30] : memref<4x4xf32, #tpu.memory_space<smem>>
    %65 = vector.broadcast %64 : f32 to vector<8x128xf32>
    %66 = arith.mulf %65, %18 : vector<8x128xf32>
    %c0_31 = arith.constant 0 : index
    %c1_32 = arith.constant 1 : index
    %67 = memref.load %arg3[%c0_31, %c1_32] : memref<4x4xf32, #tpu.memory_space<smem>>
    %68 = vector.broadcast %67 : f32 to vector<8x128xf32>
    %69 = arith.mulf %68, %33 : vector<8x128xf32>
    %70 = arith.addf %66, %69 : vector<8x128xf32>
    %c0_33 = arith.constant 0 : index
    %c2_34 = arith.constant 2 : index
    %71 = memref.load %arg3[%c0_33, %c2_34] : memref<4x4xf32, #tpu.memory_space<smem>>
    %72 = vector.broadcast %71 : f32 to vector<8x128xf32>
    %73 = arith.mulf %72, %48 : vector<8x128xf32>
    %74 = arith.addf %70, %73 : vector<8x128xf32>
    %c0_35 = arith.constant 0 : index
    %c3_36 = arith.constant 3 : index
    %75 = memref.load %arg3[%c0_35, %c3_36] : memref<4x4xf32, #tpu.memory_space<smem>>
    %76 = vector.broadcast %75 : f32 to vector<8x128xf32>
    %77 = arith.mulf %76, %63 : vector<8x128xf32>
    %78 = arith.addf %74, %77 : vector<8x128xf32>
    %c0_37 = arith.constant 0 : index
    %79 = memref.load %arg4[%c0_37] : memref<4xf32, #tpu.memory_space<smem>>
    %80 = vector.broadcast %79 : f32 to vector<8x128xf32>
    %81 = arith.addf %78, %80 : vector<8x128xf32>
    %c0_38 = arith.constant 0 : index
    %c0_39 = arith.constant 0 : index
    %c0_40 = arith.constant 0 : index
    %82 = vector.load %arg6[%c0_38, %c0_39, %c0_40] : memref<4x8x128xf32, #tpu.memory_space<vmem>>, vector<1x8x128xf32>
    %83 = vector.shape_cast %82 : vector<1x8x128xf32> to vector<8x128xf32>
    %84 = vector.shape_cast %81 : vector<8x128xf32> to vector<1x8x128xf32>
    tpu.vector_store %arg6[%c0_38, %c0_39, %c0_40], %84 {strides = array<i32>} : memref<4x8x128xf32, #tpu.memory_space<vmem>>, vector<1x8x128xf32>,
    %c1_41 = arith.constant 1 : index
    %c0_42 = arith.constant 0 : index
    %85 = memref.load %arg3[%c1_41, %c0_42] : memref<4x4xf32, #tpu.memory_space<smem>>
    %86 = vector.broadcast %85 : f32 to vector<8x128xf32>
    %87 = arith.mulf %86, %18 : vector<8x128xf32>
    %c1_43 = arith.constant 1 : index
    %c1_44 = arith.constant 1 : index
    %88 = memref.load %arg3[%c1_43, %c1_44] : memref<4x4xf32, #tpu.memory_space<smem>>
    %89 = vector.broadcast %88 : f32 to vector<8x128xf32>
    %90 = arith.mulf %89, %33 : vector<8x128xf32>
    %91 = arith.addf %87, %90 : vector<8x128xf32>
    %c1_45 = arith.constant 1 : index
    %c2_46 = arith.constant 2 : index
    %92 = memref.load %arg3[%c1_45, %c2_46] : memref<4x4xf32, #tpu.memory_space<smem>>
    %93 = vector.broadcast %92 : f32 to vector<8x128xf32>
    %94 = arith.mulf %93, %48 : vector<8x128xf32>
    %95 = arith.addf %91, %94 : vector<8x128xf32>
    %c1_47 = arith.constant 1 : index
    %c3_48 = arith.constant 3 : index
    %96 = memref.load %arg3[%c1_47, %c3_48] : memref<4x4xf32, #tpu.memory_space<smem>>
    %97 = vector.broadcast %96 : f32 to vector<8x128xf32>
    %98 = arith.mulf %97, %63 : vector<8x128xf32>
    %99 = arith.addf %95, %98 : vector<8x128xf32>
    %c1_49 = arith.constant 1 : index
    %100 = memref.load %arg4[%c1_49] : memref<4xf32, #tpu.memory_space<smem>>
    %101 = vector.broadcast %100 : f32 to vector<8x128xf32>
    %102 = arith.addf %99, %101 : vector<8x128xf32>
    %c1_50 = arith.constant 1 : index
    %c0_51 = arith.constant 0 : index
    %c0_52 = arith.constant 0 : index
    %103 = vector.load %arg6[%c1_50, %c0_51, %c0_52] : memref<4x8x128xf32, #tpu.memory_space<vmem>>, vector<1x8x128xf32>
    %104 = vector.shape_cast %103 : vector<1x8x128xf32> to vector<8x128xf32>
    %105 = vector.shape_cast %102 : vector<8x128xf32> to vector<1x8x128xf32>
    tpu.vector_store %arg6[%c1_50, %c0_51, %c0_52], %105 {strides = array<i32>} : memref<4x8x128xf32, #tpu.memory_space<vmem>>, vector<1x8x128xf32>,
    %c2_53 = arith.constant 2 : index
    %c0_54 = arith.constant 0 : index
    %106 = memref.load %arg3[%c2_53, %c0_54] : memref<4x4xf32, #tpu.memory_space<smem>>
    %107 = vector.broadcast %106 : f32 to vector<8x128xf32>
    %108 = arith.mulf %107, %18 : vector<8x128xf32>
    %c2_55 = arith.constant 2 : index
    %c1_56 = arith.constant 1 : index
    %109 = memref.load %arg3[%c2_55, %c1_56] : memref<4x4xf32, #tpu.memory_space<smem>>
    %110 = vector.broadcast %109 : f32 to vector<8x128xf32>
    %111 = arith.mulf %110, %33 : vector<8x128xf32>
    %112 = arith.addf %108, %111 : vector<8x128xf32>
    %c2_57 = arith.constant 2 : index
    %c2_58 = arith.constant 2 : index
    %113 = memref.load %arg3[%c2_57, %c2_58] : memref<4x4xf32, #tpu.memory_space<smem>>
    %114 = vector.broadcast %113 : f32 to vector<8x128xf32>
    %115 = arith.mulf %114, %48 : vector<8x128xf32>
    %116 = arith.addf %112, %115 : vector<8x128xf32>
    %c2_59 = arith.constant 2 : index
    %c3_60 = arith.constant 3 : index
    %117 = memref.load %arg3[%c2_59, %c3_60] : memref<4x4xf32, #tpu.memory_space<smem>>
    %118 = vector.broadcast %117 : f32 to vector<8x128xf32>
    %119 = arith.mulf %118, %63 : vector<8x128xf32>
    %120 = arith.addf %116, %119 : vector<8x128xf32>
    %c2_61 = arith.constant 2 : index
    %121 = memref.load %arg4[%c2_61] : memref<4xf32, #tpu.memory_space<smem>>
    %122 = vector.broadcast %121 : f32 to vector<8x128xf32>
    %123 = arith.addf %120, %122 : vector<8x128xf32>
    %c2_62 = arith.constant 2 : index
    %c0_63 = arith.constant 0 : index
    %c0_64 = arith.constant 0 : index
    %124 = vector.load %arg6[%c2_62, %c0_63, %c0_64] : memref<4x8x128xf32, #tpu.memory_space<vmem>>, vector<1x8x128xf32>
    %125 = vector.shape_cast %124 : vector<1x8x128xf32> to vector<8x128xf32>
    %126 = vector.shape_cast %123 : vector<8x128xf32> to vector<1x8x128xf32>
    tpu.vector_store %arg6[%c2_62, %c0_63, %c0_64], %126 {strides = array<i32>} : memref<4x8x128xf32, #tpu.memory_space<vmem>>, vector<1x8x128xf32>,
    %c3_65 = arith.constant 3 : index
    %c0_66 = arith.constant 0 : index
    %127 = memref.load %arg3[%c3_65, %c0_66] : memref<4x4xf32, #tpu.memory_space<smem>>
    %128 = vector.broadcast %127 : f32 to vector<8x128xf32>
    %129 = arith.mulf %128, %18 : vector<8x128xf32>
    %c3_67 = arith.constant 3 : index
    %c1_68 = arith.constant 1 : index
    %130 = memref.load %arg3[%c3_67, %c1_68] : memref<4x4xf32, #tpu.memory_space<smem>>
    %131 = vector.broadcast %130 : f32 to vector<8x128xf32>
    %132 = arith.mulf %131, %33 : vector<8x128xf32>
    %133 = arith.addf %129, %132 : vector<8x128xf32>
    %c3_69 = arith.constant 3 : index
    %c2_70 = arith.constant 2 : index
    %134 = memref.load %arg3[%c3_69, %c2_70] : memref<4x4xf32, #tpu.memory_space<smem>>
    %135 = vector.broadcast %134 : f32 to vector<8x128xf32>
    %136 = arith.mulf %135, %48 : vector<8x128xf32>
    %137 = arith.addf %133, %136 : vector<8x128xf32>
    %c3_71 = arith.constant 3 : index
    %c3_72 = arith.constant 3 : index
    %138 = memref.load %arg3[%c3_71, %c3_72] : memref<4x4xf32, #tpu.memory_space<smem>>
    %139 = vector.broadcast %138 : f32 to vector<8x128xf32>
    %140 = arith.mulf %139, %63 : vector<8x128xf32>
    %141 = arith.addf %137, %140 : vector<8x128xf32>
    %c3_73 = arith.constant 3 : index
    %142 = memref.load %arg4[%c3_73] : memref<4xf32, #tpu.memory_space<smem>>
    %143 = vector.broadcast %142 : f32 to vector<8x128xf32>
    %144 = arith.addf %141, %143 : vector<8x128xf32>
    %c3_74 = arith.constant 3 : index
    %c0_75 = arith.constant 0 : index
    %c0_76 = arith.constant 0 : index
    %145 = vector.load %arg6[%c3_74, %c0_75, %c0_76] : memref<4x8x128xf32, #tpu.memory_space<vmem>>, vector<1x8x128xf32>
    %146 = vector.shape_cast %145 : vector<1x8x128xf32> to vector<8x128xf32>
    %147 = vector.shape_cast %144 : vector<8x128xf32> to vector<1x8x128xf32>
    tpu.vector_store %arg6[%c3_74, %c0_75, %c0_76], %147 {strides = array<i32>} : memref<4x8x128xf32, #tpu.memory_space<vmem>>, vector<1x8x128xf32>,
    return
  }
  func.func @transform_0(%arg0: i32) -> (i32, i32) {
    %c0_i32 = arith.constant 0 : i32
    %c0_i32_0 = arith.constant 0 : i32
    %c0_i32_1 = arith.constant 0 : i32
    return %c0_i32, %c0_i32_0 : i32, i32
  }
  func.func @transform_1(%arg0: i32) -> i32 {
    %c0_i32 = arith.constant 0 : i32
    %c0_i32_0 = arith.constant 0 : i32
    return %c0_i32 : i32
  }
  func.func @transform_2(%arg0: i32) -> (i32, i32) {
    %c0_i32 = arith.constant 0 : i32
    %c0_i32_0 = arith.constant 0 : i32
    %c0_i32_1 = arith.constant 0 : i32
    return %c0_i32, %c0_i32_0 : i32, i32
  }
  func.func @transform_3(%arg0: i32) -> i32 {
    %c0_i32 = arith.constant 0 : i32
    %c0_i32_0 = arith.constant 0 : i32
    return %c0_i32 : i32
  }
  func.func @transform_4(%arg0: i32) -> (i32, i32, i32) {
    %c0_i32 = arith.constant 0 : i32
    %c0_i32_0 = arith.constant 0 : i32
    %c0_i32_1 = arith.constant 0 : i32
    return %c0_i32, %arg0, %c0_i32_0 : i32, i32, i32
  }
  func.func @transform_5(%arg0: i32) -> (i32, i32, i32) {
    %c0_i32 = arith.constant 0 : i32
    %c0_i32_0 = arith.constant 0 : i32
    %c0_i32_1 = arith.constant 0 : i32
    return %c0_i32, %arg0, %c0_i32_0 : i32, i32, i32
  }
}

</mosaic_0001>

<bundles_post_ra>
// kernel: tpu_custom_call.1
= control target key start
LH: loop header
LB: loop body
LE: loop exit
PB: predicated region body
PF: predicated region fallthrough
CT: control target
= control target key end

     0   :  { %10 = vsyncpa [#allocation5], 0  ;;  %s483_s0 = inlined_call_operand.vmem [shape: f32[4,2], index: 0, kind: input, shape index: {}]   ;;  %s484_s1 = inlined_call_operand.vmem [shape: f32[4], index: 1, kind: input, shape index: {}]   ;;  %s485_s2 = inlined_call_operand.vmem [shape: f32[4,4], index: 2, kind: input, shape index: {}]   ;;  %s486_s3 = inlined_call_operand.hbm [shape: f32[4], index: 3, kind: input, shape index: {}]   ;;  %s487_s4 = inlined_call_operand.vmem [shape: f32[2,8,128], index: 4, kind: input, shape index: {}]   ;;  %s488_s5 = inlined_call_operand.hbm [shape: f32[4,8,128], index: 5, kind: output, shape index: {}]  }
   0x1   :  { %11 = vsyncpa [#allocation7], 0 }
   0x2   :  { %12 = vsyncpa [#allocation4], 0  ;;  %s30_s20 = sshll.u32 %s484_s1, 4  ;;  %s31_s20 = int_to_ptr.vmem [resolvable:$true] %s30_s20 }
   0x3   :  { %13 = vsyncpa [#allocation3], 0  ;;  %s20_s23 = sshll.u32 %s483_s0, 4  ;;  %s256_s24 = scalar_lea.vmem %s31_s20, 16  ;;  %s21_s23 = int_to_ptr.vmem [resolvable:$true] %s20_s23 }
   0x4   :  { %p257_p0 = scmp.ne.s32.totalorder %s31_s20, %s256_s24  ;;  %p261_p1 = scmp.lt.s32.totalorder %s31_s20, %s31_s20 }
   0x5   :  { %p262_p2 = scmp.lt.s32.totalorder %s256_s24, %s256_s24 }
   0x7   :  { %p263_p3 = por %p262_p2, %p261_p1 }
   0x9   :  { %p264_p4 = pnand %p263_p3, %p257_p0 }
   0xb   :  { %267 = shalt.err (!%p264_p4)
}
   0xc   :  { %s332_s25 = smov [#allocation6]   ;;  %s268_s26 = scalar_lea.vmem %s21_s23, 64 }
   0xd   :  { %33 = dma.vmem_to_smem %s31_s20, 16, %s332_s25, [#allocation7]  }
   0xe   :  { %p269_p5 = scmp.ne.s32.totalorder %s21_s23, %s268_s26  ;;  %p273_p6 = scmp.lt.s32.totalorder %s21_s23, %s21_s23 }
   0xf   :  { %p274_p7 = scmp.lt.s32.totalorder %s268_s26, %s268_s26 }
  0x11   :  { %p275_p8 = por %p274_p7, %p273_p6 }
  0x13   :  { %p276_p9 = pnand %p275_p8, %p269_p5 }
  0x15   :  { %279 = shalt.err (!%p276_p9)
}
  0x16   :  { %s333_s1 = smov [#allocation2]   ;;  %s40_s28 = sshll.u32 %s485_s2, 4  ;;  %s41_s28 = int_to_ptr.vmem [resolvable:$true] %s40_s28 }
  0x17   :  { %23 = dma.vmem_to_smem %s21_s23, 64, %s333_s1, [#allocation5]  }
  0x18   :  { %s280_s29 = scalar_lea.vmem %s41_s28, 64  ;;  %p285_p11 = scmp.lt.s32.totalorder %s41_s28, %s41_s28 }
  0x19   :  { %p281_p10 = scmp.ne.s32.totalorder %s41_s28, %s280_s29  ;;  %p286_p12 = scmp.lt.s32.totalorder %s280_s29, %s280_s29 }
  0x1b   :  { %p287_p13 = por %p286_p12, %p285_p11 }
  0x1d   :  { %p288_p0 = pnand %p287_p13, %p281_p10 }
  0x1f   :  { %291 = shalt.err (!%p288_p0)
}
  0x20   :  { %s334_s30 = smov [#allocation8]   ;;  %s292_s8 = scalar_lea.hbm %s486_s3, 16 }
  0x21   :  { %43 = dma.vmem_to_smem %s41_s28, 64, %s334_s30, [#allocation7]  }
  0x22   :  { %p293_p1 = scmp.ne.s32.totalorder %s486_s3, %s292_s8  ;;  %p296_p2 = scmp.lt.u32.totalorder %s292_s8, %s486_s3 }
  0x24   :  { %p298_p3 = pnand %p296_p2, %p293_p1 }
  0x26   :  { %301 = shalt.err (!%p298_p3)
}
  0x27   :  { %s335_s12 = smov [#allocation9]  }
  0x28   :  { %51 = dma.hbm_to_smem %s486_s3, 16, %s335_s12, [#allocation4]  }
  0x29   :  { %324 = dma.done.wait [#allocation5], 64  }
  0x2a   :  { %325 = vsyncadd [#allocation5], 4294967232 }
  0x2b   :  { %326 = dma.done.wait [#allocation7], 80  }
  0x2c   :  { %327 = vsyncadd [#allocation7], 4294967216 }
  0x2d   :  { %328 = dma.done.wait [#allocation4], 16  }
  0x2e   :  { %329 = vsyncadd [#allocation4], 4294967280 }
  0x2f   :  { %66 = sfence }
  0x30   :  { %s70_s15 = sld [smem:[#allocation2]]  ;;  %s221_s16 = sld [smem:[#allocation2 + $0x1]]  ;;  %v67_v0 = vld [vmem:[%s487_s4] sm:$0xff]  ;;  %v220_v1 = vld [vmem:[%s487_s4 + $0x8] sm:$0xff] }
  0x31   :  { %s390_s17 = sld [smem:[#allocation6]]  ;;  %s223_s19 = sld [smem:[#allocation2 + $0x81]] }
  0x32   :  { %s222_s18 = sld [smem:[#allocation2 + $0x80]]  ;;  %s392_s20 = sld [smem:[#allocation6 + $0x1]] }
  0x33   :  { %s225_s21 = sld [smem:[#allocation2 + $0x100]]  ;;  %s226_s22 = sld [smem:[#allocation2 + $0x101]] }
  0x34   :  { %s400_s26 = sld [smem:[#allocation6 + $0x2]]  ;;  %s228_s1 = sld [smem:[#allocation2 + $0x180]] }
  0x35   :  { %s402_s0 = sld [smem:[#allocation2 + $0x181]]  ;;  %s404_s27 = sld [smem:[#allocation6 + $0x3]] }
  0x36   :  { %v71_v2 = vstv %s70_s15  ;;  %v74_v3 = vstv %s221_s16  ;;  %s406_s28 = sld [smem:[#allocation8]]  ;;  %s408_s29 = sld [smem:[#allocation8 + $0x1]] }
  0x37   :  { %v72_v4 = vmul.f32 %v71_v2, %v67_v0  ;;  %v75_v5 = vmul.f32 %v220_v1, %v74_v3  ;;  %s410_s30 = sld [smem:[#allocation8 + $0x2]]  ;;  %s412_s4 = sld [smem:[#allocation8 + $0x3]]  ;;  %v78_v7 = vstv %s390_s17  ;;  %v87_v9 = vstv %s223_s19 }
  0x38   :  { %v84_v6 = vstv %s222_s18  ;;  %v91_v10 = vstv %s392_s20  ;;  %s416_s6 = sld [smem:[#allocation8 + $0x80]]  ;;  %v88_v12 = vmul.f32 %v220_v1, %v87_v9  ;;  %s418_s7 = sld [smem:[#allocation8 + $0x81]] }
  0x39   :  { %v85_v8 = vmul.f32 %v84_v6, %v67_v0  ;;  %v76_v11 = vadd.f32 %v75_v5, %v72_v4  ;;  %v97_v13 = vstv %s225_s21  ;;  %v100_v14 = vstv %s226_s22  ;;  %s420_s8 = sld [smem:[#allocation8 + $0x82]]  ;;  %s424_s9 = sld [smem:[#allocation9]] }
  0x3a   :  { %v98_v15 = vmul.f32 %v97_v13, %v67_v0  ;;  %v101_v16 = vmul.f32 %v220_v1, %v100_v14  ;;  %v104_v17 = vstv %s400_s26  ;;  %v110_v18 = vstv %s228_s1  ;;  %s427_s10 = sld [smem:[#allocation8 + $0x83]]  ;;  %s429_s11 = sld [smem:[#allocation9 + $0x1]] }
  0x3b   :  { %v79_v19 = vadd.f32 %v78_v7, %v76_v11  ;;  %v89_v20 = vadd.f32 %v88_v12, %v85_v8  ;;  %v111_v21 = vmul.f32 %v110_v18, %v67_v0  ;;  %v113_v22 = vstv %s402_s0  ;;  %s432_s2 = sld [smem:[#allocation8 + $0x100]]  ;;  %s436_s12 = sld [smem:[#allocation8 + $0x101]] }
  0x3c   :  { %v102_v23 = vadd.f32 %v101_v16, %v98_v15  ;;  %v114_v24 = vmul.f32 %v220_v1, %v113_v22  ;;  %v117_v25 = vstv %s404_s27  ;;  %v123_v28 = vstv %s406_s28  ;;  %s438_s13 = sld [smem:[#allocation8 + $0x102]]  ;;  %s441_s14 = sld [smem:[#allocation8 + $0x103]] }
  0x3d   :  { %vm80_vm0 = vcmp.ge.f32.partialorder %v79_v19, 0.0  ;;  %v81_v26 = vmul.f32 0.01, %v79_v19  ;;  %v92_v27 = vadd.f32 %v91_v10, %v89_v20  ;;  %v126_v31 = vstv %s408_s29  ;;  %s443_s15 = sld [smem:[#allocation8 + $0x180]]  ;;  %s448_s16 = sld [smem:[#allocation8 + $0x181]] }
  0x3e   :  { %v105_v29 = vadd.f32 %v104_v17, %v102_v23  ;;  %v115_v30 = vadd.f32 %v114_v24, %v111_v21  ;;  %v130_v32 = vstv %s410_s30  ;;  %v134_v35 = vstv %s412_s4  ;;  %s450_s17 = sld [smem:[#allocation8 + $0x182]]  ;;  %s452_s18 = sld [smem:[#allocation8 + $0x183]] }
  0x3f   :  { %v82_v33 = vsel %vm80_vm0, %v79_v19, %v81_v26  ;;  %vm93_vm1 = vcmp.ge.f32.partialorder %v92_v27, 0.0  ;;  %v94_v34 = vmul.f32 0.01, %v92_v27  ;;  %v142_v40 = vstv %s416_s6  ;;  %s456_s19 = sld [smem:[#allocation9 + $0x2]]  ;;  %s462_s20 = sld [smem:[#allocation9 + $0x3]] }
  0x40   :  { %vm106_vm2 = vcmp.ge.f32.partialorder %v105_v29, 0.0  ;;  %v107_v36 = vmul.f32 0.01, %v105_v29  ;;  %v118_v37 = vadd.f32 %v117_v25, %v115_v30  ;;  %v124_v38 = vmul.f32 %v123_v28, %v82_v33  ;;  %s336_s21 = smov [#allocation10]  }
  0x41   :  { %v95_v39 = vsel %vm93_vm1, %v92_v27, %v94_v34  ;;  %v145_v41 = vstv %s418_s7  ;;  %v149_v42 = vstv %s420_s8  ;;  %v143_v47 = vmul.f32 %v142_v40, %v82_v33  ;;  %s206_s22 = sshll.u32 %s336_s21, 4  ;;  %s207_s22 = int_to_ptr.vmem [resolvable:$true] %s206_s22 }
  0x42   :  { %v108_v43 = vsel %vm106_vm2, %v105_v29, %v107_v36  ;;  %vm119_vm3 = vcmp.ge.f32.partialorder %v118_v37, 0.0  ;;  %v120_v44 = vmul.f32 0.01, %v118_v37  ;;  %v127_v45 = vmul.f32 %v126_v31, %v95_v39  ;;  %s302_s23 = scalar_lea.vmem %s207_s22, 512  ;;  %p307_p5 = scmp.lt.s32.totalorder %s207_s22, %s207_s22 }
  0x43   :  { %v131_v46 = vmul.f32 %v130_v32, %v108_v43  ;;  %v146_v48 = vmul.f32 %v145_v41, %v95_v39  ;;  %v150_v49 = vmul.f32 %v149_v42, %v108_v43  ;;  %v138_v52 = vstv %s424_s9  ;;  %p303_p4 = scmp.ne.s32.totalorder %s207_s22, %s302_s23  ;;  %p308_p6 = scmp.lt.s32.totalorder %s302_s23, %s302_s23 }
  0x44   :  { %v121_v50 = vsel %vm119_vm3, %v118_v37, %v120_v44  ;;  %v128_v51 = vadd.f32 %v127_v45, %v124_v38  ;;  %v153_v53 = vstv %s427_s10  ;;  %v162_v57 = vstv %s432_s2 }
  0x45   :  { %v135_v54 = vmul.f32 %v134_v35, %v121_v50  ;;  %v147_v55 = vadd.f32 %v146_v48, %v143_v47  ;;  %v154_v56 = vmul.f32 %v153_v53, %v121_v50  ;;  %v163_v59 = vmul.f32 %v162_v57, %v82_v33  ;;  %p309_p7 = por %p308_p6, %p307_p5 }
  0x46   :  { %v132_v58 = vadd.f32 %v131_v46, %v128_v51  ;;  %v165_v60 = vstv %s436_s12  ;;  %v169_v61 = vstv %s438_s13  ;;  %v173_v1 = vstv %s441_s14 }
  0x47   :  { %v151_v62 = vadd.f32 %v150_v49, %v147_v55  ;;  %v166_v63 = vmul.f32 %v165_v60, %v95_v39  ;;  %v170_v0 = vmul.f32 %v169_v61, %v108_v43  ;;  %v157_v3 = vstv %s429_s11  ;;  %p310_p8 = pnand %p309_p7, %p303_p4 }
  0x48   :  { %v136_v2 = vadd.f32 %v135_v54, %v132_v58  ;;  %v174_v4 = vmul.f32 %v173_v1, %v121_v50  ;;  %v182_v5 = vstv %s443_s15  ;;  %v185_v9 = vstv %s448_s16 }
  0x49   :  { %v155_v6 = vadd.f32 %v154_v56, %v151_v62  ;;  %v167_v7 = vadd.f32 %v166_v63, %v163_v59  ;;  %v183_v8 = vmul.f32 %v182_v5, %v82_v33  ;;  %v186_v11 = vmul.f32 %v185_v9, %v95_v39 }
  0x4a   :  { %v139_v10 = vadd.f32 %v138_v52, %v136_v2  ;;  %v189_v12 = vstv %s450_s17  ;;  %v193_v13 = vstv %s452_s18  ;;  %v177_v17 = vstv %s456_s19 }
  0x4b   :  { %v158_v14 = vadd.f32 %v157_v3, %v155_v6  ;;  %v171_v15 = vadd.f32 %v170_v0, %v167_v7  ;;  %v190_v16 = vmul.f32 %v189_v12, %v108_v43  ;;  %v187_v18 = vadd.f32 %v186_v11, %v183_v8 }
  0x4c   :  { %140 = vst [vmem:[#allocation10] sm:$0xff] %v139_v10  ;;  %v194_v19 = vmul.f32 %v193_v13, %v121_v50  ;;  %v197_v23 = vstv %s462_s20 }
  0x4d   :  { %160 = vst [vmem:[#allocation10 + $0x8] sm:$0xff] %v158_v14  ;;  %v175_v20 = vadd.f32 %v174_v4, %v171_v15  ;;  %v191_v21 = vadd.f32 %v190_v16, %v187_v18 }
  0x4f   :  { %v178_v22 = vadd.f32 %v177_v17, %v175_v20  ;;  %v195_v24 = vadd.f32 %v194_v19, %v191_v21 }
  0x51   :  { %180 = vst [vmem:[#allocation10 + $0x10] sm:$0xff] %v178_v22  ;;  %v198_v25 = vadd.f32 %v197_v23, %v195_v24 }
  0x53   :  { %200 = vst [vmem:[#allocation10 + $0x18] sm:$0xff] %v198_v25 }
  0x54   :  { %313 = shalt.err (!%p310_p8)
}
  0x55   :  { %s314_s25 = scalar_lea.hbm %s488_s5, 512 }
  0x56   :  { %p315_p9 = scmp.ne.s32.totalorder %s488_s5, %s314_s25  ;;  %p318_p10 = scmp.lt.u32.totalorder %s314_s25, %s488_s5 }
  0x58   :  { %p320_p11 = pnand %p318_p10, %p315_p9 }
  0x5a   :  { %323 = shalt.err (!%p320_p11)
}
  0x5b   :  { %s337_s28 = smov 128   ;;  %s338_s29 = smov 8  }
  0x5c   :  { %212 = dma.vmem_to_hbm [thread:$0]  %s207_s22, 512, %s488_s5, [#allocation3], %s337_s28, %s337_s28, %s338_s29  }
  0x5d   :  { %330 = dma.done.wait [#allocation3], 512  }
  0x5e   :  { %331 = vsyncadd [#allocation3], 4294966784 }
  0x5f   :  { %216 = vsyncpa [#allocation3], 1 }
  0x60   :  { %217 = vsyncpa [#allocation4], 1 }
  0x61   :  { %218 = vsyncpa [#allocation5], 1 }
  0x62   :  { %219 = vsyncpa [#allocation7], 1 }

</bundles_post_ra>
